<compile_context>
chip_gen: v5e
topology: v5e:2x2
jax: 0.10.0
libtpu: 0.0.40
codegen_flags: <defaults>
</compile_context>

<pallas_src>
import numpy as np
import jax
import jax.numpy as jnp
from jax.experimental import pallas as pl
from jax.experimental.pallas import tpu as pltpu


# ----------------- synthetic config (replaces fbg_swdm config/constants) ----
class _Config:
    N = 128     # sequence length (even, multiple of 128 -> lane aligned)
    Q = 2       # number of FBGs / channels


config = _Config()


# ----------------- host-side parametrizations (weight preparation) ----------
# TODO(synk): UnitCap/Symmetric/Centered reparametrizations and the Toeplitz /
# block-diagonal expansion are flip/gather layout plumbing on tiny (Q,1,K)
# tensors; they are hoisted into prepare_decoder_params (once per weight
# update) rather than translated into the Pallas kernel.
def effective_A(raw_A):
    # UnitCap on the A parameter
    return jax.nn.sigmoid(raw_A)


def effective_weight(raw_w, kernel_size, symmetric):
    """UnitCap (sigmoid) followed by Symmetric or Centered reparametrization.

    symmetric=True : raw_w (Q, 1, K//2+1) -> (Q, 1, K)
    symmetric=False: raw_w (Q, 1, K)      -> (Q, 1, K)
    """
    u = jax.nn.sigmoid(raw_w)                     # UnitCap
    nc = kernel_size // 2 + 1
    if symmetric:
        return jnp.concatenate([u, jnp.flip(u[..., : nc - 1], axis=-1)], axis=-1)
    # Centered
    eps = np.float32(np.finfo(np.float32).eps)
    x_symm = jnp.concatenate([u[..., :nc], jnp.flip(u[..., : nc - 1], axis=-1)],
                             axis=-1)                              # (Q,1,K)
    front = u[..., nc:]                                            # (Q,1,nc-1)
    mid = jnp.ones(u.shape[:-1] + (1,), u.dtype)                   # (Q,1,1)
    back = 1.0 / (jnp.flip(u[..., nc:], axis=-1) + eps)            # (Q,1,nc-1)
    x_non_symm = jnp.concatenate([front, mid, back], axis=-1)      # (Q,1,K)
    return x_symm * x_non_symm


def toeplitz_from_weight(w_eff, N):
    """Expand the depthwise ConvTranspose1d kernel into per-channel (N, N)
    Toeplitz matrices so the conv becomes out[b,q,:] = x[b,q,:] @ T[q].

    ConvTranspose1d (stride 1, padding p=N//2):
        out[b,q,n] = sum_j x[b,q,j] * w[q, n + p - j]  for 0 <= n+p-j < K
    """
    Q, _, K = w_eff.shape
    p = N // 2
    j = jnp.arange(N)[:, None]
    n = jnp.arange(N)[None, :]
    idx = n + p - j                                   # (N, N)
    valid = (idx >= 0) & (idx < K)
    idx_c = jnp.clip(idx, 0, K - 1)
    wq = w_eff[:, 0, :]                               # (Q, K)
    T = jnp.where(valid[None, :, :], wq[:, idx_c], 0.0)
    return T.astype(jnp.float32)                      # (Q, N, N)


def prepare_decoder_params(raw_w, raw_A, N, *, symmetric, topology):
    """One-time weight preparation (hoisted off the per-call path).

    Returns (W, A_lanes):
      'parallel': W = concat_q(A[q] * T[q])  (Q*N, N) bf16, A_lanes = None
      'serial'  : W = blockdiag(T_0..T_{Q-1}) (Q*N, Q*N) bf16,
                  A_lanes (Q, N) f32 lane-broadcast of sigmoid(A).
    """
    K = N + 1
    w_eff = effective_weight(raw_w, K, symmetric)          # (Q, 1, K)
    T = toeplitz_from_weight(w_eff, N)                     # (Q, N, N) f32
    Q = T.shape[0]
    A = effective_A(raw_A).astype(jnp.float32)             # (Q,)
    if topology == "parallel":
        W = (A[:, None, None] * T).reshape(Q * N, N).astype(jnp.bfloat16)
        A_lanes = None
    elif topology.startswith("serial"):
        W = jax.scipy.linalg.block_diag(*[T[q] for q in range(Q)])  # (Q*N, Q*N)
        W = W.astype(jnp.bfloat16)
        A_lanes = jnp.broadcast_to(A[:, None], (Q, N)).astype(jnp.float32)
    else:
        raise ValueError("Topology must be one of {'serial','parallel'}")
    return W, A_lanes


# ----------------- Pallas kernels ---------------------------------------------
def _parallel_kernel(x_ref, w_ref, o_ref):
    # x_ref: (bt, Q*N) bf16   w_ref: (Q*N, N) bf16 (A folded in)   o_ref: (bt, N) f32
    o_ref[...] = jnp.dot(x_ref[...], w_ref[...],
                         preferred_element_type=jnp.float32)


def make_serial_kernel(Q, N):
    def kernel(x_ref, w_ref, a_ref, o_ref):
        # x_ref: (bt, Q*N) bf16   w_ref: (Q*N, Q*N) bf16 block-diag
        # a_ref: (Q, N) f32       o_ref: (bt, N) f32
        # Single block-diagonal MXU matmul: conv[:, q*N:(q+1)*N] == x_q @ T[q]
        conv = jnp.dot(x_ref[...], w_ref[...],
                       preferred_element_type=jnp.float32)        # (bt, Q*N) f32
        bt = conv.shape[0]
        r = jnp.zeros((bt, N), jnp.float32)
        t2 = jnp.ones((bt, N), jnp.float32)
        # Serial FBG reflection recursion; Q is tiny & static -> unrolled.
        # All post-matmul math stays f32 (v5e VPU/EUP have no bf16 path).
        for q in range(Q):
            a = a_ref[pl.ds(q, 1), :]                  # (1, N) lane-dense A[q]
            rq = conv[:, q * N:(q + 1) * N]            # lane-aligned 128 block
            t_next = 1.0 - rq
            # divide -> EUP reciprocal (off the VALU critical path)
            s = pl.reciprocal(1.0 - a * r * rq, approx=True)
            r = r + a * rq * t2 * s
            t2 = a * t2 * (t_next * t_next) * (s * s)
        o_ref[...] = r
    return kernel


# ----------------- wrapper ----------------------------------------------------
def _choose_batch_tile(B):
    """Batch tile: multiple of 8, up to 256 rows, keeping grid >= 2 when the
    batch allows (v7x has two TensorCores; v5e/v6e don't care)."""
    b8 = ((B + 7) // 8) * 8
    if b8 <= 8:
        return b8
    n_tiles = max(2, -(-b8 // 256))
    bt = -(-b8 // n_tiles)
    return ((bt + 7) // 8) * 8


def decoder_forward(x, W, A_lanes, *, topology):
    """x: (B, Q, N) f32; W / A_lanes from prepare_decoder_params."""
    B, Q, N = x.shape
    assert N % 2 == 0 and N % 128 == 0, "config.N must be even and lane aligned"

    bt = _choose_batch_tile(B)
    B_pad = -(-B // bt) * bt
    grid = (B_pad // bt,)

    # Lane-dense input: (B, Q*N); channel q occupies lanes [q*N, (q+1)*N).
    # bf16 MXU operands, f32 accumulation.
    x_flat = x.reshape(B, Q * N).astype(jnp.bfloat16)
    if B_pad != B:
        x_flat = jnp.pad(x_flat, ((0, B_pad - B), (0, 0)))

    cparams = pltpu.CompilerParams(dimension_semantics=("parallel",))

    if topology == "parallel":
        out = pl.pallas_call(
            _parallel_kernel,
            grid=grid,
            in_specs=[
                pl.BlockSpec((bt, Q * N), lambda i: (i, 0)),     # x batch tile
                # Weights are grid-invariant (default buffering is fine at this
                # size; could be pl.Buffered(1) to skip double-buffering).
                pl.BlockSpec((Q * N, N), lambda i: (0, 0)),
            ],
            out_specs=pl.BlockSpec((bt, N), lambda i: (i, 0)),
            out_shape=jax.ShapeDtypeStruct((B_pad, N), jnp.float32),
            compiler_params=cparams,
        )(x_flat, W)
    else:
        out = pl.pallas_call(
            make_serial_kernel(Q, N),
            grid=grid,
            in_specs=[
                pl.BlockSpec((bt, Q * N), lambda i: (i, 0)),     # x batch tile
                pl.BlockSpec((Q * N, Q * N), lambda i: (0, 0)),  # block-diag W
                pl.BlockSpec((Q, N), lambda i: (0, 0)),          # A lane-dense
            ],
            out_specs=pl.BlockSpec((bt, N), lambda i: (i, 0)),
            out_shape=jax.ShapeDtypeStruct((B_pad, N), jnp.float32),
            compiler_params=cparams,
        )(x_flat, W, A_lanes)

    return out[:B]


# ----------------- pure-JAX reference (independent formulation, f32) ---------
def reference_forward(x, raw_w, raw_A, *, symmetric, topology):
    B, Q, N = x.shape
    K = N + 1
    p = N // 2
    w_eff = effective_weight(raw_w, K, symmetric)          # (Q, 1, K)
    A = effective_A(raw_A)

    # ConvTranspose1d(stride=1, padding=p, groups=Q) == grouped correlation
    # with the flipped kernel and padding (K-1-p) on both sides.
    wf = jnp.flip(w_eff, axis=-1)                          # (Q, 1, K)
    conv = jax.lax.conv_general_dilated(
        x, wf, window_strides=(1,), padding=[(K - 1 - p, K - 1 - p)],
        dimension_numbers=("NCH", "OIH", "NCH"),
        feature_group_count=Q,
        precision=jax.lax.Precision.HIGHEST)               # (B, Q, N)

    xt = jnp.transpose(conv, (1, 0, 2))                    # (Q, B, N)
    if topology.startswith("serial"):
        r = jnp.zeros_like(xt[0])
        t2 = jnp.ones_like(xt[0])
        for q in range(Q):
            rq = xt[q]
            a = A[q]
            t_next = 1.0 - rq
            s = 1.0 / (1.0 - a * r * rq)
            r = r + a * rq * t2 * s
            t2 = a * t2 * t_next ** 2 * s ** 2
        return r
    elif topology == "parallel":
        return jnp.tensordot(A, xt, axes=1)                # (B, N)
    else:
        raise ValueError("Topology must be one of {'serial','parallel'}")


# ----------------- main --------------------------------------------------------
if __name__ == "__main__":
    N, Q = config.N, config.Q
    K = N + 1
    B = 16   # -> two batch tiles of 8, grid=(2,), exercises the parallel axis

    key = jax.random.PRNGKey(0)
    k_sym, k_full, k_a, k_x = jax.random.split(key, 4)

    # synthetic "trained" raw parameters (pre-parametrization), deterministic
    raw_w_sym = 0.1 * jax.random.normal(k_sym, (Q, 1, K // 2 + 1), jnp.float32)
    raw_w_full = 0.1 * jax.random.normal(k_full, (Q, 1, K), jnp.float32)
    raw_A = jax.random.normal(k_a, (Q,), jnp.float32)

    # decoder input: the encoder latent, i.e. a softmax over the sequence axis
    x = jax.nn.softmax(jax.random.normal(k_x, (B, Q, N), jnp.float32), axis=-1)

    cases = [
        (True, raw_w_sym, "serial"),      # SymmetricNormConvTranspose1d + serial joint
        (False, raw_w_full, "parallel"),  # NonSymmetric (Centered) + parallel joint
    ]
    for symmetric, raw_w, topology in cases:
        # Weight prep hoisted out of the per-call path (once per weight update).
        W, A_lanes = prepare_decoder_params(raw_w, raw_A, N,
                                            symmetric=symmetric,
                                            topology=topology)
        y = decoder_forward(x, W, A_lanes, topology=topology)
        jax.block_until_ready(y)
        y_ref = reference_forward(x, raw_w, raw_A,
                                  symmetric=symmetric, topology=topology)
        # Tolerance reflects bf16 MXU operands (all-positive sums, no
        # cancellation) and the approx EUP reciprocal in the serial joint.
        np.testing.assert_allclose(np.asarray(y), np.asarray(y_ref),
                                   rtol=2e-2, atol=1e-3)

    print("KERNEL_OK")
</pallas_src>

<mosaic_0001>
module attributes {stable_mosaic.version = 11 : i64} {
  func.func @kernel(%arg0: i32, %arg1: memref<8x256xbf16, #tpu.memory_space<vmem>>, %arg2: memref<256x256xbf16, #tpu.memory_space<vmem>>, %arg3: memref<2x128xf32, #tpu.memory_space<vmem>>, %arg4: memref<8x128xf32, #tpu.memory_space<vmem>>) attributes {dimension_semantics = [#tpu.dimension_semantics<parallel>], iteration_bounds = array<i64: 2>, scalar_prefetch = 0 : i64, scratch_operands = 0 : i64, tpu.core_type = #tpu.core_type<tc>, window_params = [{transform_indices = @transform_0, window_bounds = array<i64: 8, 256>}, {pipeline_mode = #tpu.pipeline_mode<synchronous>, transform_indices = @transform_1, window_bounds = array<i64: 256, 256>}, {pipeline_mode = #tpu.pipeline_mode<synchronous>, transform_indices = @transform_2, window_bounds = array<i64: 2, 128>}, {transform_indices = @transform_3, window_bounds = array<i64: 8, 128>}]} {
    %c0 = arith.constant 0 : index
    %c0_0 = arith.constant 0 : index
    %0 = vector.load %arg1[%c0, %c0_0] : memref<8x256xbf16, #tpu.memory_space<vmem>>, vector<8x256xbf16>
    %c0_1 = arith.constant 0 : index
    %c0_2 = arith.constant 0 : index
    %1 = vector.load %arg2[%c0_1, %c0_2] : memref<256x256xbf16, #tpu.memory_space<vmem>>, vector<256x256xbf16>
    %cst = arith.constant dense<0.000000e+00> : vector<8x256xf32>
    %2 = tpu.matmul %0, %1, %cst {dimension_numbers = #tpu.dot_dimension_numbers<[1], [0], [0], [1], [0, 0, 1, 1], [], []>} : vector<8x256xbf16>, vector<256x256xbf16>, vector<8x256xf32> -> vector<8x256xf32>
    %cst_3 = arith.constant 0.000000e+00 : f32
    %3 = vector.broadcast %cst_3 : f32 to vector<8x128xf32>
    %cst_4 = arith.constant 1.000000e+00 : f32
    %4 = vector.broadcast %cst_4 : f32 to vector<8x128xf32>
    %c0_5 = arith.constant 0 : index
    %c0_6 = arith.constant 0 : index
    %5 = vector.load %arg3[%c0_5, %c0_6] : memref<2x128xf32, #tpu.memory_space<vmem>>, vector<1x128xf32>
    %6 = vector.extract_strided_slice %2 {offsets = [0, 0], sizes = [8, 128], strides = [1, 1]} : vector<8x256xf32> to vector<8x128xf32>
    %cst_7 = arith.constant 1.000000e+00 : f32
    %7 = vector.broadcast %cst_7 : f32 to vector<8x128xf32>
    %8 = arith.subf %7, %6 : vector<8x128xf32>
    %9 = vector.broadcast %5 : vector<1x128xf32> to vector<8x128xf32>
    %10 = arith.mulf %9, %3 : vector<8x128xf32>
    %11 = arith.mulf %10, %6 : vector<8x128xf32>
    %cst_8 = arith.constant 1.000000e+00 : f32
    %12 = vector.broadcast %cst_8 : f32 to vector<8x128xf32>
    %13 = arith.subf %12, %11 : vector<8x128xf32>
    %14 = tpu.reciprocal %13 {approx = true} : vector<8x128xf32> -> vector<8x128xf32>
    %15 = vector.broadcast %5 : vector<1x128xf32> to vector<8x128xf32>
    %16 = arith.mulf %15, %6 : vector<8x128xf32>
    %17 = arith.mulf %16, %4 : vector<8x128xf32>
    %18 = arith.mulf %17, %14 : vector<8x128xf32>
    %19 = arith.addf %3, %18 : vector<8x128xf32>
    %20 = vector.broadcast %5 : vector<1x128xf32> to vector<8x128xf32>
    %21 = arith.mulf %20, %4 : vector<8x128xf32>
    %22 = arith.mulf %8, %8 : vector<8x128xf32>
    %23 = arith.mulf %21, %22 : vector<8x128xf32>
    %24 = arith.mulf %14, %14 : vector<8x128xf32>
    %25 = arith.mulf %23, %24 : vector<8x128xf32>
    %c1 = arith.constant 1 : index
    %c0_9 = arith.constant 0 : index
    %26 = vector.load %arg3[%c1, %c0_9] : memref<2x128xf32, #tpu.memory_space<vmem>>, vector<1x128xf32>
    %27 = vector.extract_strided_slice %2 {offsets = [0, 128], sizes = [8, 128], strides = [1, 1]} : vector<8x256xf32> to vector<8x128xf32>
    %28 = vector.broadcast %26 : vector<1x128xf32> to vector<8x128xf32>
    %29 = arith.mulf %28, %19 : vector<8x128xf32>
    %30 = arith.mulf %29, %27 : vector<8x128xf32>
    %cst_10 = arith.constant 1.000000e+00 : f32
    %31 = vector.broadcast %cst_10 : f32 to vector<8x128xf32>
    %32 = arith.subf %31, %30 : vector<8x128xf32>
    %33 = tpu.reciprocal %32 {approx = true} : vector<8x128xf32> -> vector<8x128xf32>
    %34 = vector.broadcast %26 : vector<1x128xf32> to vector<8x128xf32>
    %35 = arith.mulf %34, %27 : vector<8x128xf32>
    %36 = arith.mulf %35, %25 : vector<8x128xf32>
    %37 = arith.mulf %36, %33 : vector<8x128xf32>
    %38 = arith.addf %19, %37 : vector<8x128xf32>
    %c0_11 = arith.constant 0 : index
    %c0_12 = arith.constant 0 : index
    %39 = vector.load %arg4[%c0_11, %c0_12] : memref<8x128xf32, #tpu.memory_space<vmem>>, vector<8x128xf32>
    tpu.vector_store %arg4[%c0_11, %c0_12], %38 {strides = array<i32>} : memref<8x128xf32, #tpu.memory_space<vmem>>, vector<8x128xf32>,
    return
  }
  func.func @transform_0(%arg0: i32) -> (i32, i32) {
    %c0_i32 = arith.constant 0 : i32
    %c0_i32_0 = arith.constant 0 : i32
    return %arg0, %c0_i32 : i32, i32
  }
  func.func @transform_1(%arg0: i32) -> (i32, i32) {
    %c0_i32 = arith.constant 0 : i32
    %c0_i32_0 = arith.constant 0 : i32
    %c0_i32_1 = arith.constant 0 : i32
    return %c0_i32, %c0_i32_0 : i32, i32
  }
  func.func @transform_2(%arg0: i32) -> (i32, i32) {
    %c0_i32 = arith.constant 0 : i32
    %c0_i32_0 = arith.constant 0 : i32
    %c0_i32_1 = arith.constant 0 : i32
    return %c0_i32, %c0_i32_0 : i32, i32
  }
  func.func @transform_3(%arg0: i32) -> (i32, i32) {
    %c0_i32 = arith.constant 0 : i32
    %c0_i32_0 = arith.constant 0 : i32
    return %arg0, %c0_i32 : i32, i32
  }
}

</mosaic_0001>

<bundles_post_ra>
// kernel: tpu_custom_call.1
= control target key start
LH: loop header
LB: loop body
LE: loop exit
PB: predicated region body
PF: predicated region fallthrough
CT: control target
= control target key end

     0   :  { %8 = vsyncpa [#allocation3], 0  ;;  %s1193_s0 = inlined_call_operand.hbm [shape: bf16[16,256], index: 0, kind: input, shape index: {}]   ;;  %s1194_s1 = inlined_call_operand.hbm [shape: bf16[256,256], index: 1, kind: input, shape index: {}]   ;;  %s1195_s2 = inlined_call_operand.hbm [shape: f32[2,128], index: 2, kind: input, shape index: {}]   ;;  %s1196_s3 = inlined_call_operand.hbm [shape: f32[16,128], index: 3, kind: output, shape index: {}]  }
   0x1   :  { %10 = vsyncpa [#allocation3 + $0x1], 0 }
   0x2   :  { %11 = vsyncpa [#allocation6], 0 }
   0x3   :  { %12 = vsyncpa [#allocation4], 0 }
   0x4   :  { %14 = vsyncpa [#allocation4 + $0x1], 0  ;;  %s1041_s12 = smov 0   ;;  %s1043_s13 = smov 0  }
   0x5   :  { %s1045_s14 = smov 0   ;;  %s1047_s15 = smov 0  }
   0x6 LB: > { %s130_s18 = sshll.u32 %s1194_s1, 4  ;;  %s1065_s19 = sadd.s32 4294967295, %s1015_s15   ;;  %s1015_s15 = sphi %s1047_s15, %s1207_s15   ;;  %s1011_s14 = sphi %s1045_s14, %s1206_s14   ;;  %s1007_s13 = sphi %s1043_s13, %s1205_s13   ;;  %s1003_s12 = sphi %s1041_s12, %s1204_s12   ;;  %s131_s18 = int_to_ptr.hbm [resolvable:$true] %s130_s18 }
   0x7   : > { %p603_p0 = scmp.ge.s32.totalorder %s1015_s15, 1  ;;  %p41_p1 = scmp.eq.s32.totalorder %s1065_s19, 0 }
   0x8   : > { %p119_p2 = scmp.lt.s32.totalorder %s1015_s15, 3  ;;  %s1017_s21 = smov [#allocation5]  }
   0x9   : > { %s132_s22 = sshll.u32 %s1017_s21, 4  ;;  %s145_s25 = sshll.u32 %s1195_s2, 4  ;;  %s133_s22 = int_to_ptr.vmem [resolvable:$true] %s132_s22  ;;  %s146_s25 = int_to_ptr.hbm [resolvable:$true] %s145_s25 }
   0xa   : > { %p1070_p3 = pnand %p603_p0, %p119_p2  ;;  %s1018_s26 = smov [#allocation7]  }
   0xb   : > { %s147_s27 = sshll.u32 %s1018_s26, 4  ;;  %s1019_s28 = smov 128   ;;  %s148_s27 = int_to_ptr.vmem [resolvable:$true] %s147_s27 }
   0xc   : > { %p792_p4 = pneg %p1070_p3  ;;  %s1020_s29 = smov 8  }
   0xd   : > { %s602_s30 = sadd.s32 4294967294, %s1015_s15   ;;  %s1084_s4 = sadd.s32 1, %s1015_s15  }
   0xe   : > { %p793_p6 = pnand %p792_p4, %p41_p1  ;;  %s24_s5 = ssub.s32 %s1015_s15, %s1084_s4 }
   0xf   : > { %s27_s6 = sadd.s32 1, %s1011_s14  ;;  %p25_p7 = scmp.eq.s32.totalorder %s24_s5, 0 }
  0x10   : > { %795 = dma.hbm_to_vmem [thread:$0]  (!%p793_p6), %s131_s18, 4096, %s133_s22, [#allocation6], %s1019_s28, %s1019_s28, %s1020_s29  }
  0x11   : > { %798 = dma.hbm_to_vmem [thread:$0]  (!%p793_p6), %s146_s25, 32, %s148_s27, [#allocation6]  }
  0x12   : > { %p34_p8 = scmp.ne.s32.totalorder %s1011_s14, %s1007_s13  ;;  %p35_p9 = scmp.eq.s32.totalorder %s1015_s15, 0 }
  0x13   : > { %p40_p10 = scmp.ne.s32.totalorder %s1007_s13, %s1003_s12  ;;  %p106_p13 = scmp.eq.s32.totalorder %s1065_s19, 1 }
  0x14   : > { %s1095_s7 = scalar_select %p25_p7, %s1011_s14, %s27_s6  }
  0x15   : > { %p1097_p11 = por %p35_p9, %p34_p8  ;;  %p1103_p12 = por %p41_p1, %p40_p10 }
  0x16   : > { %p112_p0 = scmp.eq.s32.totalorder %s602_s30, 1  ;;  %p809_p2 = scmp.lt.s32.totalorder %s1015_s15, 2 }
  0x17   : > { %s158_s10 = sand.u32 1, %s1011_s14   ;;  %p1110_p4 = por %p106_p13, %p34_p8 }
  0x18   : > { %p1114_p6 = por %p112_p0, %p40_p10  ;;  %s607_s17 = sshll.u32 %s158_s10, 3 }
  0x19   : > { %s747_s18 = sshll.u32 %s1015_s15, 3  ;;  %s162_s24 = scalar_lea.vmem [#allocation2], %s607_s17 }
  0x1a   : > { %s167_s23 = scalar_lea.hbm %s1193_s0, %s747_s18  ;;  %s171_s25 = sshll.u32 %s162_s24, 4  ;;  %s172_s25 = int_to_ptr.vmem [resolvable:$true] %s171_s25 }
  0x1b   : > { %s169_s26 = sshll.u32 %s167_s23, 4  ;;  %p1124_p7 = pnand %p809_p2, %p1097_p11  ;;  %s170_s26 = int_to_ptr.hbm [resolvable:$true] %s169_s26 }
  0x1c   : > { %s159_s28 = scalar_lea.sflag [#allocation3], %s158_s10  ;;  %s915_s29 = sshra.s32 %s170_s26, 4  ;;  %s916_s29 = int_to_ptr.hbm [resolvable:$true] %s915_s29 }
  0x1d   : > { %s917_s30 = scalar_lea.hbm %s916_s29, 8  ;;  %p919_p9 = pneg %p1124_p7 }
  0x1e   : > { %p918_p8 = scmp.ne.s32.totalorder %s916_s29, %s917_s30  ;;  %s922_s17 = scalar_lea.hbm %s1193_s0, 16 }
  0x1f   : > { %p923_p11 = scmp.lt.s32.totalorder %s916_s29, %s1193_s0  ;;  %p924_p0 = scmp.lt.s32.totalorder %s922_s17, %s917_s30 }
  0x20   : > { %p920_p10 = pnand %p919_p9, %p918_p8 }
  0x21   : > { %p925_p2 = por %p924_p0, %p923_p11 }
  0x22   : > { %p921_p13 = pneg %p920_p10 }
  0x24   : > { %p926_p5 = pnand %p925_p2, %p921_p13 }
  0x26   : > { %929 = shalt.err (!%p926_p5)
}
  0x27   : > { %802 = dma.hbm_to_vmem [thread:$0]  (!%p1124_p7), %s170_s26, 128, %s172_s25, %s159_s28  }
  0x28   : > { %180 = sbr.rel (%p1070_p3) target bundleno = 244 (0xf4), region = 32  ;;  %s1141_s10 = sand.u32 (!%p1070_p3), 1, %s1007_s13  }
  0x29   : > { %s611_s21 = sshll.u32 (!%p1070_p3), %s1141_s10, 3  ;;  %s183_s22 = scalar_lea.sflag (!%p1070_p3), [#allocation3], %s1141_s10 }
  0x2a   : > { %s1147_s23 = scalar_lea.vmem (!%p1070_p3), [#allocation2], %s611_s21 }
  0x2d   : > { %990 = dma.done.wait (%p1103_p12), %s183_s22, 128  }
  0x2e   : > { %992 = vsyncadd (%p1103_p12), %s183_s22, 4294967168 }
  0x2f   : > { %994 = dma.done.wait (%p41_p1), [#allocation6], 4128  }
  0x30   : > { %996 = vsyncadd (%p41_p1), [#allocation6], 4294963168  ;;  %v673_v0 = vld [vmem:[#allocation5 + $0x70] sm:$0xf]  ;;  %v763_v1 = vld [vmem:[#allocation5 + $0x74] sm:$0xf0] }
  0x31   : > { %v737_v2 = vld [vmem:[#allocation5 + $0xf0] sm:$0xf]  ;;  %v674_v3 = vor.u32 %v763_v1, %v673_v0  ;;  %v779_v4 = vld [vmem:[#allocation5 + $0xf4] sm:$0xf0]  ;;  %v762_v5 = vld [vmem:[#allocation5 + $0x74] sm:$0xf] }
  0x32   : > { %v675_v6 = vld [vmem:[#allocation5 + $0x78] sm:$0xf0]  ;;  %v738_v7 = vor.u32 %v779_v4, %v737_v2  ;;  %v778_v9 = vld [vmem:[#allocation5 + $0xf4] sm:$0xf]  ;;  %v665_v11 = vld [vmem:[#allocation5 + $0x60] sm:$0xf] }
  0x33   : > { %v678_v8 = vor.u32 %v762_v5, %v675_v6  ;;  %v739_v10 = vld [vmem:[#allocation5 + $0xf8] sm:$0xf0]  ;;  %420 = vmatpush.bf16.msra.mxu0 %v674_v3  ;;  %v761_v13 = vld [vmem:[#allocation5 + $0x64] sm:$0xf0]  ;;  %v729_v14 = vld [vmem:[#allocation5 + $0xe0] sm:$0xf] }
  0x34   : > { %v742_v12 = vor.u32 %v778_v9, %v739_v10  ;;  %v777_v15 = vld [vmem:[#allocation5 + $0xe4] sm:$0xf0]  ;;  %433 = vmatpush.bf16.msra.mxu1 %v738_v7  ;;  %v666_v16 = vor.u32 %v761_v13, %v665_v11  ;;  %v760_v18 = vld [vmem:[#allocation5 + $0x64] sm:$0xf]  ;;  %v667_v19 = vld [vmem:[#allocation5 + $0x68] sm:$0xf0] }
  0x35   : > { %446 = vmatpush.bf16.msra.mxu2 %v678_v8  ;;  %v730_v17 = vor.u32 %v777_v15, %v729_v14  ;;  %v776_v20 = vld [vmem:[#allocation5 + $0xe4] sm:$0xf]  ;;  %v670_v21 = vor.u32 %v760_v18, %v667_v19  ;;  %v731_v22 = vld [vmem:[#allocation5 + $0xe8] sm:$0xf0]  ;;  %v657_v23 = vld [vmem:[#allocation5 + $0x50] sm:$0xf] }
  0x36   : > { %459 = vmatpush.bf16.msra.mxu3 %v742_v12  ;;  %v759_v24 = vld [vmem:[#allocation5 + $0x54] sm:$0xf0]  ;;  %v734_v25 = vor.u32 %v776_v20, %v731_v22  ;;  %v721_v26 = vld [vmem:[#allocation5 + $0xd0] sm:$0xf]  ;;  %v758_v28 = vld [vmem:[#allocation5 + $0x54] sm:$0xf] }
  0x37   : > { %v775_v27 = vld [vmem:[#allocation5 + $0xd4] sm:$0xf0]  ;;  %421 = vmatpush.bf16.msra.mxu0 %v666_v16  ;;  %v658_v29 = vor.u32 %v759_v24, %v657_v23  ;;  %v659_v30 = vld [vmem:[#allocation5 + $0x58] sm:$0xf0]  ;;  %v774_v31 = vld [vmem:[#allocation5 + $0xd4] sm:$0xf] }
  0x38   : > { %v723_v32 = vld [vmem:[#allocation5 + $0xd8] sm:$0xf0]  ;;  %434 = vmatpush.bf16.msra.mxu1 %v730_v17  ;;  %v722_v33 = vor.u32 %v775_v27, %v721_v26  ;;  %v662_v34 = vor.u32 %v758_v28, %v659_v30  ;;  %v649_v35 = vld [vmem:[#allocation5 + $0x40] sm:$0xf]  ;;  %v757_v36 = vld [vmem:[#allocation5 + $0x44] sm:$0xf0] }
  0x39   : > { %447 = vmatpush.bf16.msra.mxu2 %v670_v21  ;;  %v713_v37 = vld [vmem:[#allocation5 + $0xc0] sm:$0xf]  ;;  %v726_v38 = vor.u32 %v774_v31, %v723_v32  ;;  %v773_v39 = vld [vmem:[#allocation5 + $0xc4] sm:$0xf0]  ;;  %v756_v40 = vld [vmem:[#allocation5 + $0x44] sm:$0xf]  ;;  %v650_v44 = vor.u32 %v757_v36, %v649_v35 }
  0x3a   : > { %460 = vmatpush.bf16.msra.mxu3 %v734_v25  ;;  %v651_v41 = vld [vmem:[#allocation5 + $0x48] sm:$0xf0]  ;;  %v772_v42 = vld [vmem:[#allocation5 + $0xc4] sm:$0xf]  ;;  %v714_v45 = vor.u32 %v773_v39, %v713_v37  ;;  %v641_v47 = vld [vmem:[#allocation5 + $0x30] sm:$0xf] }
  0x3b   : > { %v715_v43 = vld [vmem:[#allocation5 + $0xc8] sm:$0xf0]  ;;  %422 = vmatpush.bf16.msra.mxu0 %v658_v29  ;;  %v654_v46 = vor.u32 %v756_v40, %v651_v41  ;;  %v755_v48 = vld [vmem:[#allocation5 + $0x34] sm:$0xf0]  ;;  %v705_v49 = vld [vmem:[#allocation5 + $0xb0] sm:$0xf] }
  0x3c   : > { %435 = vmatpush.bf16.msra.mxu1 %v722_v33  ;;  %v718_v50 = vor.u32 %v772_v42, %v715_v43  ;;  %v771_v51 = vld [vmem:[#allocation5 + $0xb4] sm:$0xf0]  ;;  %v754_v52 = vld [vmem:[#allocation5 + $0x34] sm:$0xf]  ;;  %v643_v53 = vld [vmem:[#allocation5 + $0x38] sm:$0xf0]  ;;  %v642_v56 = vor.u32 %v755_v48, %v641_v47 }
  0x3d   : > { %448 = vmatpush.bf16.msra.mxu2 %v662_v34  ;;  %v770_v54 = vld [vmem:[#allocation5 + $0xb4] sm:$0xf]  ;;  %v707_v55 = vld [vmem:[#allocation5 + $0xb8] sm:$0xf0]  ;;  %v706_v57 = vor.u32 %v771_v51, %v705_v49  ;;  %v646_v58 = vor.u32 %v754_v52, %v643_v53  ;;  %v633_v59 = vld [vmem:[#allocation5 + $0x20] sm:$0xf] }
  0x3e   : > { %461 = vmatpush.bf16.msra.mxu3 %v726_v38  ;;  %v753_v60 = vld [vmem:[#allocation5 + $0x24] sm:$0xf0]  ;;  %v697_v61 = vld [vmem:[#allocation5 + $0xa0] sm:$0xf]  ;;  %v710_v62 = vor.u32 %v770_v54, %v707_v55  ;;  %v752_v0 = vld [vmem:[#allocation5 + $0x24] sm:$0xf] }
  0x3f   : > { %423 = vmatpush.bf16.msra.mxu0 %v650_v44  ;;  %v769_v63 = vld [vmem:[#allocation5 + $0xa4] sm:$0xf0]  ;;  %v635_v1 = vld [vmem:[#allocation5 + $0x28] sm:$0xf0]  ;;  %v768_v2 = vld [vmem:[#allocation5 + $0xa4] sm:$0xf]  ;;  %v634_v4 = vor.u32 %v753_v60, %v633_v59 }
  0x40   : > { %436 = vmatpush.bf16.msra.mxu1 %v714_v45  ;;  %v699_v3 = vld [vmem:[#allocation5 + $0xa8] sm:$0xf0]  ;;  %v625_v5 = vld [vmem:[#allocation5 + $0x10] sm:$0xf]  ;;  %v698_v6 = vor.u32 %v769_v63, %v697_v61  ;;  %v638_v7 = vor.u32 %v752_v0, %v635_v1  ;;  %v751_v8 = vld [vmem:[#allocation5 + $0x14] sm:$0xf0] }
  0x41   : > { %449 = vmatpush.bf16.msra.mxu2 %v654_v46  ;;  %v689_v9 = vld [vmem:[#allocation5 + $0x90] sm:$0xf]  ;;  %v767_v10 = vld [vmem:[#allocation5 + $0x94] sm:$0xf0]  ;;  %v702_v11 = vor.u32 %v768_v2, %v699_v3  ;;  %v750_v12 = vld [vmem:[#allocation5 + $0x14] sm:$0xf]  ;;  %v626_v16 = vor.u32 %v751_v8, %v625_v5 }
  0x42   : > { %462 = vmatpush.bf16.msra.mxu3 %v718_v50  ;;  %v627_v13 = vld [vmem:[#allocation5 + $0x18] sm:$0xf0]  ;;  %v766_v14 = vld [vmem:[#allocation5 + $0x94] sm:$0xf]  ;;  %v690_v18 = vor.u32 %v767_v10, %v689_v9  ;;  %v617_v20 = vld [vmem:[#allocation5] sm:$0xf] }
  0x43   : > { %424 = vmatpush.bf16.msra.mxu0 %v642_v56  ;;  %v691_v15 = vld [vmem:[#allocation5 + $0x98] sm:$0xf0]  ;;  %v630_v19 = vor.u32 %v750_v12, %v627_v13  ;;  %v749_v21 = vld [vmem:[#allocation5 + $0x4] sm:$0xf0]  ;;  %v681_v22 = vld [vmem:[#allocation5 + $0x80] sm:$0xf] }
  0x44   : > { %437 = vmatpush.bf16.msra.mxu1 %v706_v57  ;;  %v220_v17 = vld [vmem:[%s1147_s23] sm:$0xff]  ;;  %v694_v23 = vor.u32 %v766_v14, %v691_v15  ;;  %v765_v24 = vld [vmem:[#allocation5 + $0x84] sm:$0xf0]  ;;  %v748_v25 = vld [vmem:[#allocation5 + $0x4] sm:$0xf]  ;;  %v618_v30 = vor.u32 %v749_v21, %v617_v20  ;;  %s744_s20 = sshll.u32 %s1065_s19, 3 }
  0x45   : > { %450 = vmatpush.bf16.msra.mxu2 %v646_v58  ;;  %v619_v26 = vld [vmem:[#allocation5 + $0x8] sm:$0xf0]  ;;  %v764_v27 = vld [vmem:[#allocation5 + $0x84] sm:$0xf]  ;;  %v254_v29 = vunpack.c.l.b16 %v220_v17  ;;  %v255_v31 = vunpack.c.h.b16 %v220_v17  ;;  %v682_v32 = vor.u32 %v765_v24, %v681_v22  ;;  %v849_v37 = vld [vmem:[#allocation7] ss:$0 sm:$0xff]  ;;  %s508_s25 = scalar_lea.hbm %s1196_s3, %s744_s20 }
  0x46   : > { %463 = vmatpush.bf16.msra.mxu3 %v710_v62  ;;  %v683_v28 = vld [vmem:[#allocation5 + $0x88] sm:$0xf0]  ;;  %v622_v33 = vor.u32 %v748_v25, %v619_v26  ;;  %v475_v39 = vmul.f32 0.0, %v849_v37  ;;  %v850_v49 = vld [vmem:[#allocation7 + $0x1] ss:$0 sm:$0xff]  ;;  %s219_s26 = scalar_lea.vmem [#allocation8], %s611_s21 }
  0x47   : > { %425 = vmatpush.bf16.msra.mxu0 %v634_v4  ;;  %v686_v34 = vor.u32 %v764_v27, %v683_v28  ;;  %v256_v35 = vpack.c.b16 %v254_v29, %v254_v29  ;;  %v257_v36 = vpack.c.b16 %v255_v31, %v255_v31  ;;  %s510_s27 = sshll.u32 %s219_s26, 4  ;;  %s512_s28 = sshll.u32 %s508_s25, 4  ;;  %s511_s27 = int_to_ptr.vmem [resolvable:$true] %s510_s27  ;;  %s513_s28 = int_to_ptr.hbm [resolvable:$true] %s512_s28 }
  0x48   : > { %438 = vmatpush.bf16.msra.mxu1 %v698_v6  ;;  %s498_s29 = scalar_lea.sflag [#allocation4], %s1141_s10  ;;  %s959_s19 = sshra.s32 %s513_s28, 4  ;;  %s960_s19 = int_to_ptr.hbm [resolvable:$true] %s959_s19 }
  0x49   : > { %451 = vmatpush.bf16.msra.mxu2 %v638_v7  ;;  %s961_s30 = scalar_lea.hbm %s960_s19, 8  ;;  %s965_s17 = scalar_lea.hbm %s1196_s3, 16 }
  0x4a   : > { %464 = vmatpush.bf16.msra.mxu3 %v702_v11  ;;  %p962_p1 = scmp.ne.s32.totalorder %s960_s19, %s961_s30  ;;  %p966_p12 = scmp.lt.s32.totalorder %s960_s19, %s1196_s3 }
  0x4b   : > { %426 = vmatpush.bf16.msra.mxu0 %v626_v16  ;;  %p967_p7 = scmp.lt.s32.totalorder %s965_s17, %s961_s30 }
  0x4c   : > { %439 = vmatpush.bf16.msra.mxu1 %v690_v18  ;;  %p963_p3 = pnand %p962_p1, %p1110_p4 }
  0x4d   : > { %452 = vmatpush.bf16.msra.mxu2 %v630_v19  ;;  %p968_p8 = por %p967_p7, %p966_p12 }
  0x4e   : > { %465 = vmatpush.bf16.msra.mxu3 %v694_v23  ;;  %p964_p5 = pneg %p963_p3 }
  0x4f   : > { %427 = vmatpush.bf16.msra.mxu0 %v618_v30 }
  0x50   : > { %440 = vmatpush.bf16.msra.mxu1 %v682_v32  ;;  %p969_p9 = pnand %p968_p8, %p964_p5 }
  0x51   : > { %453 = vmatpush.bf16.msra.mxu2 %v622_v33 }
  0x52   : > { %466 = vmatpush.bf16.msra.mxu3 %v686_v34  ;;  %428 = vmatmul.bf16.vlgmr.msra.gmra.mxu0 %v256_v35 }
  0x53   : > { %441 = vmatmul.bf16.vlgmr.msra.gmra.mxu1 %v257_v36 }
  0x54   : > { %454 = vmatmul.bf16.vlgmr.msra.gmra.mxu2 %v256_v35 }
  0x55   : > { %467 = vmatmul.bf16.vlgmr.msra.gmra.mxu3 %v257_v36 }
  0xcf   : > { %v429_v38 = vpop.f32.mrf.mxu0 }
  0xd0   : > { %v442_v40 = vpop.f32.mrf.mxu1 }
  0xd1   : > { %v443_v41 = vadd.f32 %v442_v40, %v429_v38 }
  0xd3   : > { %v476_v42 = vmul.f32 %v475_v39, %v443_v41  ;;  %v479_v48 = vmul.f32 %v849_v37, %v443_v41  ;;  %v473_v51 = vsub.f32 1.0, %v443_v41 }
  0xd5   : > { %v477_v43 = vsub.f32 1.0, %v476_v42  ;;  %v482_v57 = vmul.f32 %v473_v51, %v473_v51 }
  0xd7   : > { %v455_v44 = vpop.f32.mrf.mxu2  ;;  %851 = vrcp.f32 %v477_v43  ;;  %v431_v46 = vpop.f32.mrf.mxu0  ;;  %v483_v61 = vmul.f32 %v849_v37, %v482_v57 }
  0xd8   : > { %v468_v45 = vpop.f32.mrf.mxu3  ;;  %v444_v47 = vpop.f32.mrf.mxu1 }
  0xd9   : > { %v469_v55 = vadd.f32 %v468_v45, %v455_v44 }
  0xdb   : > { %v492_v63 = vmul.f32 %v850_v49, %v469_v55 }
  0xdd   : > { %v852_v50 = vpop.eup %851 }
  0xde   : > { %v480_v52 = vmul.f32 %v852_v50, %v479_v48  ;;  %v484_v59 = vmul.f32 %v852_v50, %v852_v50 }
  0xdf   : > { %v457_v53 = vpop.f32.mrf.mxu2 }
  0xe0   : > { %v470_v54 = vpop.f32.mrf.mxu3  ;;  %v488_v56 = vmul.f32 %v850_v49, %v480_v52  ;;  %v485_v62 = vmul.f32 %v484_v59, %v483_v61 }
  0xe2   : > { %v489_v58 = vmul.f32 %v488_v56, %v469_v55  ;;  %v493_v0 = vmul.f32 %v492_v63, %v485_v62 }
  0xe4   : > { %v490_v60 = vsub.f32 1.0, %v489_v58 }
  0xe6   : > { %853 = vrcp.f32 %v490_v60 }
  0xec   : > { %v854_v1 = vpop.eup %853 }
  0xed   : > { %v494_v2 = vmul.f32 %v854_v1, %v493_v0 }
  0xef   : > { %v495_v3 = vadd.f32 %v494_v2, %v480_v52 }
  0xf1   : > { %496 = vst [vmem:[%s219_s26] sm:$0xff] %v495_v3 }
  0xf2   : > { %972 = shalt.err (!%p969_p9)
}
  0xf3   : > { %790 = dma.vmem_to_hbm [thread:$0]  (%p1110_p4), %s511_s27, 128, %s513_s28, %s498_s29  }
  0xf4 PF: > { %s524_s10 = sand.u32 1, %s1003_s12   ;;  %p1203_p10 = scmp.ge.s32.totalorder %s1015_s15, 2 }
  0xf5   : > { %s525_s21 = scalar_lea.sflag [#allocation4], %s524_s10 }
  0xf6   : > { %p804_p13 = pnand %p1203_p10, %p1114_p6 }
  0xf8   : > { %p805_p11 = pneg %p804_p13 }
  0xfa   : > { %998 = dma.done.wait (%p805_p11), %s525_s21, 128  }
  0xfb   : > { %1000 = vsyncadd (%p805_p11), %s525_s21, 4294967168  ;;  %p17_p0 = scmp.ge.s32.totalorder %s1084_s4, 4   ;;  %s1204_s12 = smov %s1007_s13 }
  0xfc   : > { %s1205_s13 = smov %s1011_s14  ;;  %s1206_s14 = smov %s1095_s7 }
  0xfd   : > { %s1207_s15 = smov %s1084_s4  ;;  %19 = sbr.rel (!%p17_p0) target bundleno = 6 (0x6), region = 85 }
 0x102   :  { %531 = vsyncpa [#allocation3], 1 }
 0x103   :  { %533 = vsyncpa [#allocation3 + $0x1], 1 }
 0x104   :  { %534 = vsyncpa [#allocation6], 1 }
 0x105   :  { %535 = vsyncpa [#allocation4], 1 }
 0x106   :  { %537 = vsyncpa [#allocation4 + $0x1], 1 }

</bundles_post_ra>
